<compile_context>
chip_gen: v7x
topology: tpu7x:2x2x1
jax: 0.10.0
libtpu: 0.0.40
codegen_flags: <defaults>
</compile_context>

<pallas_src>
import math

import jax
import jax.numpy as jnp
from jax import lax
from jax.experimental import pallas as pl
from jax.experimental.pallas import tpu as pltpu


# ---------------------------------------------------------------------------
# Kernel: per-batch fused  max/mean -> conv3x3(pad=1) -> sigmoid
# ---------------------------------------------------------------------------
def spatial_attention_kernel(w_ref, x_ref, o_ref):
    # w_ref: SMEM (18,) f32  -- conv weight (1, 2, 3, 3) flattened row-major
    # x_ref: VMEM (1, C, H, W) block for the current batch element
    # o_ref: VMEM (1, 1, H, W) block
    _, C, H, W = x_ref.shape

    # ---- fused channel max & mean (VPU, unrolled over the small channel dim) ----
    x0 = x_ref[0, 0].astype(jnp.float32)
    x_max = x0
    x_sum = x0
    for c in range(1, C):
        xc = x_ref[0, c].astype(jnp.float32)
        x_max = jnp.maximum(x_max, xc)
        x_sum = x_sum + xc
    x_mean = x_sum * (1.0 / C)

    # ---- 3x3 conv with zero padding via 0/1 shift matrices (tiny MXU matmuls) ----
    # (L_o @ a)[i, w] = a[i + o, w]   (zero-filled out of range)
    # (a @ R_o)[h, j] = a[h, j + o]   (zero-filled out of range)
    ri = lax.broadcasted_iota(jnp.int32, (H, H), 0)
    ci = lax.broadcasted_iota(jnp.int32, (H, H), 1)
    row_shift = {o: (ci == ri + o).astype(jnp.float32) for o in (-1, 1)}
    rj = lax.broadcasted_iota(jnp.int32, (W, W), 0)
    cj = lax.broadcasted_iota(jnp.int32, (W, W), 1)
    col_shift = {o: (rj == cj + o).astype(jnp.float32) for o in (-1, 1)}

    acc = jnp.zeros((H, W), jnp.float32)
    for kh in range(3):                       # kernel row  (offset oh = kh - 1)
        row_acc = jnp.zeros((H, W), jnp.float32)
        for kw in range(3):                   # kernel col  (offset ow = kw - 1)
            # weighted 2-channel tap: w[0,kh,kw]*max + w[1,kh,kw]*mean  (scalars from SMEM)
            m = (w_ref[0 * 9 + kh * 3 + kw] * x_max
                 + w_ref[1 * 9 + kh * 3 + kw] * x_mean)
            if kw == 1:
                row_acc = row_acc + m
            else:
                row_acc = row_acc + jnp.dot(m, col_shift[kw - 1],
                                            preferred_element_type=jnp.float32)
        if kh == 1:
            acc = acc + row_acc
        else:
            acc = acc + jnp.dot(row_shift[kh - 1], row_acc,
                                preferred_element_type=jnp.float32)

    # ---- sigmoid ----
    o_ref[0, 0] = (1.0 / (1.0 + jnp.exp(-acc))).astype(o_ref.dtype)


# ---------------------------------------------------------------------------
# Wrapper
# ---------------------------------------------------------------------------
def spatial_attention_forward(x, conv_w):
    """x: (B, C, H, W); conv_w: (1, 2, 3, 3) in PyTorch OIHW layout (bias=False)."""
    B, C, H, W = x.shape
    w_flat = conv_w.reshape(-1).astype(jnp.float32)   # (18,) = [c=0 taps..., c=1 taps...]

    return pl.pallas_call(
        spatial_attention_kernel,
        out_shape=jax.ShapeDtypeStruct((B, 1, H, W), x.dtype),
        grid=(B,),
        in_specs=[
            pl.BlockSpec(memory_space=pltpu.MemorySpace.SMEM),        # weights, resident scalars
            pl.BlockSpec((1, C, H, W), lambda b: (b, 0, 0, 0)),       # per-batch input block
        ],
        out_specs=pl.BlockSpec((1, 1, H, W), lambda b: (b, 0, 0, 0)),
        compiler_params=pltpu.CompilerParams(
            dimension_semantics=("parallel",)),
    )(w_flat, x)


# ---------------------------------------------------------------------------
# Pure-JAX reference (sanity check only)
# ---------------------------------------------------------------------------
def spatial_attention_reference(x, conv_w):
    x1 = jnp.max(x, axis=1, keepdims=True)
    x2 = jnp.mean(x, axis=1, keepdims=True)
    xc = jnp.concatenate([x1, x2], axis=1)                            # (B, 2, H, W)
    y = lax.conv_general_dilated(
        xc, conv_w, window_strides=(1, 1), padding=((1, 1), (1, 1)),
        dimension_numbers=("NCHW", "OIHW", "NCHW"))
    return jax.nn.sigmoid(y)


# ---------------------------------------------------------------------------
if __name__ == "__main__":
    B, C, H, W = 2, 4, 16, 16

    key = jax.random.PRNGKey(0)
    kx, kw = jax.random.split(key)

    x = jax.random.normal(kx, (B, C, H, W), jnp.float32)
    # Conv2d(2, 1, k=3) init: normal(0, sqrt(2 / (k*k*out_channels))), bias=False
    fan_out = 3 * 3 * 1
    conv_w = math.sqrt(2.0 / fan_out) * jax.random.normal(kw, (1, 2, 3, 3), jnp.float32)

    out = spatial_attention_forward(x, conv_w)
    out = jax.block_until_ready(out)

    ref = spatial_attention_reference(x, conv_w)
    assert out.shape == (B, 1, H, W)
    assert jnp.allclose(out, ref, atol=1e-5, rtol=1e-5), "mismatch vs reference"

    print("KERNEL_OK")
</pallas_src>

<mosaic_0001>
module attributes {stable_mosaic.version = 11 : i64} {
  func.func @spatial_attention_kernel(%arg0: i32, %arg1: memref<18xf32, #tpu.memory_space<smem>>, %arg2: memref<1x4x16x16xf32, #tpu.memory_space<vmem>>, %arg3: memref<1x1x16x16xf32, #tpu.memory_space<vmem>>) attributes {dimension_semantics = [#tpu.dimension_semantics<parallel>], iteration_bounds = array<i64: 2>, scalar_prefetch = 0 : i64, scratch_operands = 0 : i64, tpu.core_type = #tpu.core_type<tc>, window_params = [{transform_indices = @transform_0, window_bounds = array<i64: 18>}, {transform_indices = @transform_1, window_bounds = array<i64: 1, 4, 16, 16>}, {transform_indices = @transform_2, window_bounds = array<i64: 1, 1, 16, 16>}]} {
    %c0 = arith.constant 0 : index
    %c0_0 = arith.constant 0 : index
    %c0_1 = arith.constant 0 : index
    %c0_2 = arith.constant 0 : index
    %0 = vector.load %arg2[%c0, %c0_0, %c0_1, %c0_2] : memref<1x4x16x16xf32, #tpu.memory_space<vmem>>, vector<1x1x16x16xf32>
    %1 = vector.shape_cast %0 : vector<1x1x16x16xf32> to vector<16x16xf32>
    %c0_3 = arith.constant 0 : index
    %c1 = arith.constant 1 : index
    %c0_4 = arith.constant 0 : index
    %c0_5 = arith.constant 0 : index
    %2 = vector.load %arg2[%c0_3, %c1, %c0_4, %c0_5] : memref<1x4x16x16xf32, #tpu.memory_space<vmem>>, vector<1x1x16x16xf32>
    %3 = vector.shape_cast %2 : vector<1x1x16x16xf32> to vector<16x16xf32>
    %4 = arith.maximumf %1, %3 : vector<16x16xf32>
    %5 = arith.addf %1, %3 : vector<16x16xf32>
    %c0_6 = arith.constant 0 : index
    %c2 = arith.constant 2 : index
    %c0_7 = arith.constant 0 : index
    %c0_8 = arith.constant 0 : index
    %6 = vector.load %arg2[%c0_6, %c2, %c0_7, %c0_8] : memref<1x4x16x16xf32, #tpu.memory_space<vmem>>, vector<1x1x16x16xf32>
    %7 = vector.shape_cast %6 : vector<1x1x16x16xf32> to vector<16x16xf32>
    %8 = arith.maximumf %4, %7 : vector<16x16xf32>
    %9 = arith.addf %5, %7 : vector<16x16xf32>
    %c0_9 = arith.constant 0 : index
    %c3 = arith.constant 3 : index
    %c0_10 = arith.constant 0 : index
    %c0_11 = arith.constant 0 : index
    %10 = vector.load %arg2[%c0_9, %c3, %c0_10, %c0_11] : memref<1x4x16x16xf32, #tpu.memory_space<vmem>>, vector<1x1x16x16xf32>
    %11 = vector.shape_cast %10 : vector<1x1x16x16xf32> to vector<16x16xf32>
    %12 = arith.maximumf %8, %11 : vector<16x16xf32>
    %13 = arith.addf %9, %11 : vector<16x16xf32>
    %cst = arith.constant 2.500000e-01 : f32
    %14 = vector.broadcast %cst : f32 to vector<16x16xf32>
    %15 = arith.mulf %13, %14 : vector<16x16xf32>
    %16 = tpu.iota {dimensions = array<i32: 0>} : vector<16x16xi32>
    %17 = tpu.iota {dimensions = array<i32: 1>} : vector<16x16xi32>
    %c-1_i32 = arith.constant -1 : i32
    %18 = vector.broadcast %c-1_i32 : i32 to vector<16x16xi32>
    %19 = arith.addi %16, %18 : vector<16x16xi32>
    %20 = arith.cmpi eq, %17, %19 : vector<16x16xi32>
    %21 = arith.extui %20 : vector<16x16xi1> to vector<16x16xi32>
    %22 = arith.sitofp %21 : vector<16x16xi32> to vector<16x16xf32>
    %c1_i32 = arith.constant 1 : i32
    %23 = vector.broadcast %c1_i32 : i32 to vector<16x16xi32>
    %24 = arith.addi %16, %23 : vector<16x16xi32>
    %25 = arith.cmpi eq, %17, %24 : vector<16x16xi32>
    %26 = arith.extui %25 : vector<16x16xi1> to vector<16x16xi32>
    %27 = arith.sitofp %26 : vector<16x16xi32> to vector<16x16xf32>
    %28 = tpu.iota {dimensions = array<i32: 0>} : vector<16x16xi32>
    %29 = tpu.iota {dimensions = array<i32: 1>} : vector<16x16xi32>
    %c-1_i32_12 = arith.constant -1 : i32
    %30 = vector.broadcast %c-1_i32_12 : i32 to vector<16x16xi32>
    %31 = arith.addi %29, %30 : vector<16x16xi32>
    %32 = arith.cmpi eq, %28, %31 : vector<16x16xi32>
    %33 = arith.extui %32 : vector<16x16xi1> to vector<16x16xi32>
    %34 = arith.sitofp %33 : vector<16x16xi32> to vector<16x16xf32>
    %c1_i32_13 = arith.constant 1 : i32
    %35 = vector.broadcast %c1_i32_13 : i32 to vector<16x16xi32>
    %36 = arith.addi %29, %35 : vector<16x16xi32>
    %37 = arith.cmpi eq, %28, %36 : vector<16x16xi32>
    %38 = arith.extui %37 : vector<16x16xi1> to vector<16x16xi32>
    %39 = arith.sitofp %38 : vector<16x16xi32> to vector<16x16xf32>
    %cst_14 = arith.constant 0.000000e+00 : f32
    %40 = vector.broadcast %cst_14 : f32 to vector<16x16xf32>
    %cst_15 = arith.constant 0.000000e+00 : f32
    %41 = vector.broadcast %cst_15 : f32 to vector<16x16xf32>
    %c0_16 = arith.constant 0 : index
    %42 = memref.load %arg1[%c0_16] : memref<18xf32, #tpu.memory_space<smem>>
    %43 = vector.broadcast %42 : f32 to vector<16x16xf32>
    %44 = arith.mulf %43, %12 : vector<16x16xf32>
    %c9 = arith.constant 9 : index
    %45 = memref.load %arg1[%c9] : memref<18xf32, #tpu.memory_space<smem>>
    %46 = vector.broadcast %45 : f32 to vector<16x16xf32>
    %47 = arith.mulf %46, %15 : vector<16x16xf32>
    %48 = arith.addf %44, %47 : vector<16x16xf32>
    %cst_17 = arith.constant dense<0.000000e+00> : vector<16x16xf32>
    %49 = tpu.matmul %48, %34, %cst_17 {dimension_numbers = #tpu.dot_dimension_numbers<[1], [0], [0], [1], [0, 0, 1, 1], [], []>} : vector<16x16xf32>, vector<16x16xf32>, vector<16x16xf32> -> vector<16x16xf32>
    %50 = arith.addf %41, %49 : vector<16x16xf32>
    %c1_18 = arith.constant 1 : index
    %51 = memref.load %arg1[%c1_18] : memref<18xf32, #tpu.memory_space<smem>>
    %52 = vector.broadcast %51 : f32 to vector<16x16xf32>
    %53 = arith.mulf %52, %12 : vector<16x16xf32>
    %c10 = arith.constant 10 : index
    %54 = memref.load %arg1[%c10] : memref<18xf32, #tpu.memory_space<smem>>
    %55 = vector.broadcast %54 : f32 to vector<16x16xf32>
    %56 = arith.mulf %55, %15 : vector<16x16xf32>
    %57 = arith.addf %53, %56 : vector<16x16xf32>
    %58 = arith.addf %50, %57 : vector<16x16xf32>
    %c2_19 = arith.constant 2 : index
    %59 = memref.load %arg1[%c2_19] : memref<18xf32, #tpu.memory_space<smem>>
    %60 = vector.broadcast %59 : f32 to vector<16x16xf32>
    %61 = arith.mulf %60, %12 : vector<16x16xf32>
    %c11 = arith.constant 11 : index
    %62 = memref.load %arg1[%c11] : memref<18xf32, #tpu.memory_space<smem>>
    %63 = vector.broadcast %62 : f32 to vector<16x16xf32>
    %64 = arith.mulf %63, %15 : vector<16x16xf32>
    %65 = arith.addf %61, %64 : vector<16x16xf32>
    %cst_20 = arith.constant dense<0.000000e+00> : vector<16x16xf32>
    %66 = tpu.matmul %65, %39, %cst_20 {dimension_numbers = #tpu.dot_dimension_numbers<[1], [0], [0], [1], [0, 0, 1, 1], [], []>} : vector<16x16xf32>, vector<16x16xf32>, vector<16x16xf32> -> vector<16x16xf32>
    %67 = arith.addf %58, %66 : vector<16x16xf32>
    %cst_21 = arith.constant dense<0.000000e+00> : vector<16x16xf32>
    %68 = tpu.matmul %22, %67, %cst_21 {dimension_numbers = #tpu.dot_dimension_numbers<[1], [0], [0], [1], [0, 0, 1, 1], [], []>} : vector<16x16xf32>, vector<16x16xf32>, vector<16x16xf32> -> vector<16x16xf32>
    %69 = arith.addf %40, %68 : vector<16x16xf32>
    %cst_22 = arith.constant 0.000000e+00 : f32
    %70 = vector.broadcast %cst_22 : f32 to vector<16x16xf32>
    %c3_23 = arith.constant 3 : index
    %71 = memref.load %arg1[%c3_23] : memref<18xf32, #tpu.memory_space<smem>>
    %72 = vector.broadcast %71 : f32 to vector<16x16xf32>
    %73 = arith.mulf %72, %12 : vector<16x16xf32>
    %c12 = arith.constant 12 : index
    %74 = memref.load %arg1[%c12] : memref<18xf32, #tpu.memory_space<smem>>
    %75 = vector.broadcast %74 : f32 to vector<16x16xf32>
    %76 = arith.mulf %75, %15 : vector<16x16xf32>
    %77 = arith.addf %73, %76 : vector<16x16xf32>
    %cst_24 = arith.constant dense<0.000000e+00> : vector<16x16xf32>
    %78 = tpu.matmul %77, %34, %cst_24 {dimension_numbers = #tpu.dot_dimension_numbers<[1], [0], [0], [1], [0, 0, 1, 1], [], []>} : vector<16x16xf32>, vector<16x16xf32>, vector<16x16xf32> -> vector<16x16xf32>
    %79 = arith.addf %70, %78 : vector<16x16xf32>
    %c4 = arith.constant 4 : index
    %80 = memref.load %arg1[%c4] : memref<18xf32, #tpu.memory_space<smem>>
    %81 = vector.broadcast %80 : f32 to vector<16x16xf32>
    %82 = arith.mulf %81, %12 : vector<16x16xf32>
    %c13 = arith.constant 13 : index
    %83 = memref.load %arg1[%c13] : memref<18xf32, #tpu.memory_space<smem>>
    %84 = vector.broadcast %83 : f32 to vector<16x16xf32>
    %85 = arith.mulf %84, %15 : vector<16x16xf32>
    %86 = arith.addf %82, %85 : vector<16x16xf32>
    %87 = arith.addf %79, %86 : vector<16x16xf32>
    %c5 = arith.constant 5 : index
    %88 = memref.load %arg1[%c5] : memref<18xf32, #tpu.memory_space<smem>>
    %89 = vector.broadcast %88 : f32 to vector<16x16xf32>
    %90 = arith.mulf %89, %12 : vector<16x16xf32>
    %c14 = arith.constant 14 : index
    %91 = memref.load %arg1[%c14] : memref<18xf32, #tpu.memory_space<smem>>
    %92 = vector.broadcast %91 : f32 to vector<16x16xf32>
    %93 = arith.mulf %92, %15 : vector<16x16xf32>
    %94 = arith.addf %90, %93 : vector<16x16xf32>
    %cst_25 = arith.constant dense<0.000000e+00> : vector<16x16xf32>
    %95 = tpu.matmul %94, %39, %cst_25 {dimension_numbers = #tpu.dot_dimension_numbers<[1], [0], [0], [1], [0, 0, 1, 1], [], []>} : vector<16x16xf32>, vector<16x16xf32>, vector<16x16xf32> -> vector<16x16xf32>
    %96 = arith.addf %87, %95 : vector<16x16xf32>
    %97 = arith.addf %69, %96 : vector<16x16xf32>
    %cst_26 = arith.constant 0.000000e+00 : f32
    %98 = vector.broadcast %cst_26 : f32 to vector<16x16xf32>
    %c6 = arith.constant 6 : index
    %99 = memref.load %arg1[%c6] : memref<18xf32, #tpu.memory_space<smem>>
    %100 = vector.broadcast %99 : f32 to vector<16x16xf32>
    %101 = arith.mulf %100, %12 : vector<16x16xf32>
    %c15 = arith.constant 15 : index
    %102 = memref.load %arg1[%c15] : memref<18xf32, #tpu.memory_space<smem>>
    %103 = vector.broadcast %102 : f32 to vector<16x16xf32>
    %104 = arith.mulf %103, %15 : vector<16x16xf32>
    %105 = arith.addf %101, %104 : vector<16x16xf32>
    %cst_27 = arith.constant dense<0.000000e+00> : vector<16x16xf32>
    %106 = tpu.matmul %105, %34, %cst_27 {dimension_numbers = #tpu.dot_dimension_numbers<[1], [0], [0], [1], [0, 0, 1, 1], [], []>} : vector<16x16xf32>, vector<16x16xf32>, vector<16x16xf32> -> vector<16x16xf32>
    %107 = arith.addf %98, %106 : vector<16x16xf32>
    %c7 = arith.constant 7 : index
    %108 = memref.load %arg1[%c7] : memref<18xf32, #tpu.memory_space<smem>>
    %109 = vector.broadcast %108 : f32 to vector<16x16xf32>
    %110 = arith.mulf %109, %12 : vector<16x16xf32>
    %c16 = arith.constant 16 : index
    %111 = memref.load %arg1[%c16] : memref<18xf32, #tpu.memory_space<smem>>
    %112 = vector.broadcast %111 : f32 to vector<16x16xf32>
    %113 = arith.mulf %112, %15 : vector<16x16xf32>
    %114 = arith.addf %110, %113 : vector<16x16xf32>
    %115 = arith.addf %107, %114 : vector<16x16xf32>
    %c8 = arith.constant 8 : index
    %116 = memref.load %arg1[%c8] : memref<18xf32, #tpu.memory_space<smem>>
    %117 = vector.broadcast %116 : f32 to vector<16x16xf32>
    %118 = arith.mulf %117, %12 : vector<16x16xf32>
    %c17 = arith.constant 17 : index
    %119 = memref.load %arg1[%c17] : memref<18xf32, #tpu.memory_space<smem>>
    %120 = vector.broadcast %119 : f32 to vector<16x16xf32>
    %121 = arith.mulf %120, %15 : vector<16x16xf32>
    %122 = arith.addf %118, %121 : vector<16x16xf32>
    %cst_28 = arith.constant dense<0.000000e+00> : vector<16x16xf32>
    %123 = tpu.matmul %122, %39, %cst_28 {dimension_numbers = #tpu.dot_dimension_numbers<[1], [0], [0], [1], [0, 0, 1, 1], [], []>} : vector<16x16xf32>, vector<16x16xf32>, vector<16x16xf32> -> vector<16x16xf32>
    %124 = arith.addf %115, %123 : vector<16x16xf32>
    %cst_29 = arith.constant dense<0.000000e+00> : vector<16x16xf32>
    %125 = tpu.matmul %27, %124, %cst_29 {dimension_numbers = #tpu.dot_dimension_numbers<[1], [0], [0], [1], [0, 0, 1, 1], [], []>} : vector<16x16xf32>, vector<16x16xf32>, vector<16x16xf32> -> vector<16x16xf32>
    %126 = arith.addf %97, %125 : vector<16x16xf32>
    %cst_30 = arith.constant 0.000000e+00 : f32
    %127 = vector.broadcast %cst_30 : f32 to vector<16x16xf32>
    %128 = arith.subf %127, %126 : vector<16x16xf32>
    %129 = math.exp %128 : vector<16x16xf32>
    %cst_31 = arith.constant 1.000000e+00 : f32
    %130 = vector.broadcast %cst_31 : f32 to vector<16x16xf32>
    %131 = arith.addf %130, %129 : vector<16x16xf32>
    %cst_32 = arith.constant 1.000000e+00 : f32
    %132 = vector.broadcast %cst_32 : f32 to vector<16x16xf32>
    %133 = arith.divf %132, %131 : vector<16x16xf32>
    %c0_33 = arith.constant 0 : index
    %c0_34 = arith.constant 0 : index
    %c0_35 = arith.constant 0 : index
    %c0_36 = arith.constant 0 : index
    %134 = vector.load %arg3[%c0_33, %c0_34, %c0_35, %c0_36] : memref<1x1x16x16xf32, #tpu.memory_space<vmem>>, vector<1x1x16x16xf32>
    %135 = vector.shape_cast %134 : vector<1x1x16x16xf32> to vector<16x16xf32>
    %136 = vector.shape_cast %133 : vector<16x16xf32> to vector<1x1x16x16xf32>
    tpu.vector_store %arg3[%c0_33, %c0_34, %c0_35, %c0_36], %136 {strides = array<i32>} : memref<1x1x16x16xf32, #tpu.memory_space<vmem>>, vector<1x1x16x16xf32>,
    return
  }
  func.func @transform_0(%arg0: i32) -> i32 {
    %c0_i32 = arith.constant 0 : i32
    %c0_i32_0 = arith.constant 0 : i32
    return %c0_i32 : i32
  }
  func.func @transform_1(%arg0: i32) -> (i32, i32, i32, i32) {
    %c0_i32 = arith.constant 0 : i32
    %c0_i32_0 = arith.constant 0 : i32
    %c0_i32_1 = arith.constant 0 : i32
    %c0_i32_2 = arith.constant 0 : i32
    return %arg0, %c0_i32, %c0_i32_0, %c0_i32_1 : i32, i32, i32, i32
  }
  func.func @transform_2(%arg0: i32) -> (i32, i32, i32, i32) {
    %c0_i32 = arith.constant 0 : i32
    %c0_i32_0 = arith.constant 0 : i32
    %c0_i32_1 = arith.constant 0 : i32
    %c0_i32_2 = arith.constant 0 : i32
    return %arg0, %c0_i32, %c0_i32_0, %c0_i32_1 : i32, i32, i32, i32
  }
}

</mosaic_0001>

<bundles_post_ra>
// kernel: tpu_custom_call.1
= control target key start
LH: loop header
LB: loop body
LE: loop exit
PB: predicated region body
PF: predicated region fallthrough
CT: control target
= control target key end

     0   :  { %7 = vsyncpa [#allocation5], 0  ;;  %s1853_s0 = inlined_call_operand.hbm [shape: f32[18], index: 0, kind: input, shape index: {}]   ;;  %s1854_s1 = inlined_call_operand.hbm [shape: f32[2,4,16,16], index: 1, kind: input, shape index: {}]   ;;  %s1855_s2 = inlined_call_operand.hbm [shape: f32[2,1,16,16], index: 2, kind: output, shape index: {}]  }
   0x1   :  { %8 = vsyncpa [#allocation3], 0 }
   0x2   :  { %10 = vsyncpa [#allocation3 + $0x1], 0 }
   0x3   :  { %11 = vsyncpa [#allocation4], 0 }
   0x4   :  { %13 = vsyncpa [#allocation4 + $0x1], 0  ;;  %s1517_s9 = smov 0   ;;  %s1519_s10 = smov 0  }
   0x5   :  { %s1521_s11 = smov 0   ;;  %s1523_s12 = smov 0  }
   0x6 LB: > { %s1538_s13 = sadd.s32 4294967295, %s1491_s12   ;;  %s1094_s14 = sadd.s32 4294967294, %s1491_s12   ;;  %s1491_s12 = sphi %s1523_s12, %s1879_s12   ;;  %s1487_s11 = sphi %s1521_s11, %s1878_s11   ;;  %s1483_s10 = sphi %s1519_s10, %s1877_s10   ;;  %s1479_s9 = sphi %s1517_s9, %s1876_s9  }
   0x7   : > { %s1542_s15 = sadd.s32 1, %s1491_s12   ;;  %s47_s16 = sadd.s32 1, %s1487_s11 }
   0x8   : > { %s44_s17 = ssub.s32 %s1491_s12, %s1542_s15  ;;  %p54_p0 = scmp.ne.s32.totalorder %s1487_s11, %s1483_s10 }
   0x9   : > { %p45_p1 = scmp.eq.s32.totalorder %s44_s17, 0  ;;  %p55_p2 = scmp.eq.s32.totalorder %s1491_s12, 0 }
   0xa   : > { %p60_p3 = scmp.ne.s32.totalorder %s1483_s10, %s1479_s9  ;;  %p1856_p4 = scmp.eq.s32.totalorder %s1538_s13, 0 }
   0xb   : > { %s1554_s18 = scalar_select %p45_p1, %s1487_s11, %s47_s16  }
   0xc   : > { %p1556_p5 = por %p55_p2, %p54_p0  ;;  %p1562_p6 = por %p1856_p4, %p60_p3 }
   0xd   : > { %p84_p7 = scmp.eq.s32.totalorder %s1538_s13, 1  ;;  %p90_p8 = scmp.eq.s32.totalorder %s1094_s14, 1 }
   0xe   : > { %s1860_s20 = scalar_select %p1562_p6, 1, 0 }
   0xf   : > { %p1095_p9 = scmp.ge.s32.totalorder %s1491_s12, 1  ;;  %p97_p10 = scmp.lt.s32.totalorder %s1491_s12, 3 }
  0x10   : > { %p1569_p11 = por %p84_p7, %p54_p0  ;;  %p1573_p12 = por %p90_p8, %p60_p3 }
  0x11   : > { %p1577_p13 = pnand %p1095_p9, %p97_p10  ;;  %p1328_p4 = scmp.lt.s32.totalorder %s1491_s12, 2 }
  0x12   : > { %s1861_s21 = scalar_select %p1569_p11, 1, 0 }
  0x13   : > { %s1862_s22 = scalar_select %p1573_p12, 1, 0 }
  0x14   : > { %p1315_p2 = pneg %p1577_p13  ;;  %s119_s24 = sand.u32 1, %s1487_s11  }
  0x15   : > { %s1169_s25 = sshll.u32 %s1491_s12, 10  ;;  %p1864_p6 = scmp.eq.s32.totalorder %s1538_s13, 0 }
  0x16   : > { %p1591_p7 = pnand %p1328_p4, %p1556_p5  ;;  %s1098_s27 = sshll.u32 %s119_s24, 6 }
  0x17   : > { %p1316_p0 = pnand %p1315_p2, %p1864_p6  ;;  %s1378_s30 = scalar_lea.hbm %s1853_s0, 16 }
  0x18   : > { %p1379_p3 = scmp.ne.s32.totalorder %s1853_s0, %s1378_s30  ;;  %p1385_p6 = scmp.lt.u32.totalorder %s1378_s30, %s1853_s0 }
  0x19   : > { %p1380_p8 = pneg %p1316_p0 }
  0x1b   : > { %p1381_p9 = pnand %p1380_p8, %p1379_p3 }
  0x1d   : > { %p1382_p10 = pneg %p1381_p9 }
  0x1f   : > { %p1387_p4 = pnand %p1385_p6, %p1382_p10 }
  0x21   : > { %1390 = shalt.err (!%p1387_p4)
}
  0x22   : > { %s1493_s7 = smov [#allocation2]   ;;  %s1610_s19 = scalar_lea.hbm %s1854_s1, %s1169_s25 }
  0x23   : > { %1318 = dma.hbm_to_smem (!%p1316_p0), %s1853_s0, 16, %s1493_s7, [#allocation5]  }
  0x24   : > { %s123_s28 = scalar_lea.vmem [#allocation6], %s1098_s27  ;;  %s1614_s30 = scalar_lea.sflag [#allocation3], %s119_s24 }
  0x25   : > { %s130_s29 = sshll.u32 %s123_s28, 4  ;;  %s1391_s3 = scalar_lea.hbm %s1610_s19, 1024  ;;  %s1612_s29 = int_to_ptr.vmem [resolvable:$true] %s130_s29 }
  0x26   : > { %p1392_p5 = scmp.ne.s32.totalorder %s1610_s19, %s1391_s3  ;;  %p1393_p2 = pneg %p1591_p7 }
  0x27   : > { %s1396_s5 = scalar_lea.hbm %s1854_s1, 2048  ;;  %p1397_p8 = scmp.lt.u32.totalorder %s1610_s19, %s1854_s1 }
  0x28   : > { %p1394_p0 = pnand %p1393_p2, %p1392_p5  ;;  %p1398_p9 = scmp.lt.u32.totalorder %s1396_s5, %s1391_s3 }
  0x29   : > { %p1400_p6 = scmp.lt.u32.totalorder %s1391_s3, %s1610_s19 }
  0x2a   : > { %p1395_p3 = pneg %p1394_p0  ;;  %p1399_p10 = por %p1398_p9, %p1397_p8 }
  0x2c   : > { %p1401_p4 = por %p1400_p6, %p1399_p10 }
  0x2e   : > { %p1402_p1 = pnand %p1401_p4, %p1395_p3 }
  0x30   : > { %1405 = shalt.err (!%p1402_p1)
}
  0x31   : > { %s1406_s24 = scalar_lea.vmem %s1612_s29, 1024  ;;  %s1494_s27 = smov [#allocation6]  }
  0x32   : > { %p1407_p5 = scmp.ne.s32.totalorder %s1612_s29, %s1406_s24  ;;  %s1411_s8 = sshll.u32 %s1494_s27, 4  ;;  %s1412_s8 = int_to_ptr.vmem [resolvable:$false] %s1411_s8 }
  0x33   : > { %s1413_s14 = scalar_lea.vmem %s1412_s8, 2048  ;;  %p1414_p11 = scmp.lt.s32.totalorder %s1612_s29, %s1412_s8 }
  0x34   : > { %p1409_p0 = pnand %p1407_p5, %p1393_p2  ;;  %p1415_p8 = scmp.lt.s32.totalorder %s1413_s14, %s1406_s24 }
  0x36   : > { %p1410_p12 = pneg %p1409_p0  ;;  %p1416_p9 = por %p1415_p8, %p1414_p11 }
  0x38   : > { %p1417_p10 = pnand %p1416_p9, %p1410_p12 }
  0x3a   : > { %1420 = shalt.err (!%p1417_p10)
}
  0x3b   : > { %s1495_s16 = smov 128   ;;  %s1496_s17 = smov 8  }
  0x3c   : > { %1322 = dma.hbm_to_vmem [thread:$0]  (!%p1591_p7), %s1610_s19, 1024, %s1612_s29, %s1614_s30, %s1495_s16, %s1495_s16, %s1496_s17  }
  0x3d   : > { %142 = sbr.rel (%p1577_p13) target bundleno = 588 (0x24c), region = 28  ;;  %p1866_p1 = scmp.eq.s32.totalorder (!%p1577_p13), %s1538_s13, 0 }
  0x44   : > { %1466 = dma.done.wait (%p1866_p1), [#allocation5], 16   ;;  %p1867_p2 = pmov %p1866_p1 }
  0x45   : > { %s1649_s28 = sand.u32 1, %s1483_s10   ;;  %p1868_p11 = scmp.ne.s32.totalorder %s1860_s20, 0 }
  0x46   : > { %1468 = vsyncadd (%p1867_p2), [#allocation5], 4294967280  ;;  %s1103_s3 = sshll.u32 %s1649_s28, 6  ;;  %s149_s25 = scalar_lea.sflag [#allocation3], %s1649_s28 }
  0x47   : > { %s152_s4 = scalar_lea.vmem [#allocation6], %s1103_s3 }
  0x48   : > { %1470 = dma.done.wait (%p1868_p11), %s149_s25, 1024  }
  0x49   : > { %1472 = vsyncadd (%p1868_p11), %s149_s25, 4294966272 }
  0x4a   : > { %157 = sfence }
  0x4b   : > { %v199_v0 = vlaneseq  ;;  %v174_v1 = vld [vmem:[%s152_s4] sm:$0xff]  ;;  %v175_v2 = vld [vmem:[%s152_s4 + $0x8] sm:$0xff]  ;;  %v1105_v3 = vld [vmem:[%s152_s4 + $0x10] sm:$0xff]  ;;  %s1657_s23 = sld [smem:[#allocation2]]  ;;  %s1663_s20 = sld [smem:[#allocation2 + $0x9]]  ;;  %vm254_vm6 = vcmask 130048  }
  0x4c   : > { %v1106_v4 = vld [vmem:[%s152_s4 + $0x18] sm:$0xff]  ;;  %v179_v5 = vmax.f32 %v174_v1, %v1105_v3  ;;  %v181_v6 = vadd.f32 %v1105_v3, %v174_v1  ;;  %v1107_v7 = vld [vmem:[%s152_s4 + $0x20] sm:$0xff]  ;;  %v1108_v8 = vld [vmem:[%s152_s4 + $0x28] sm:$0xff]  ;;  %s1665_s26 = sld [smem:[#allocation2 + $0x2]]  ;;  %s1667_s19 = sld [smem:[#allocation2 + $0xb]] }
  0x4d   : > { %v1659_v9 = vshrl.u32 %v199_v0, 7  ;;  %v1661_v10 = vand.u32 127, %v199_v0  ;;  %v180_v11 = vmax.f32 %v175_v2, %v1106_v4  ;;  %v182_v12 = vadd.f32 %v1106_v4, %v175_v2  ;;  %v1109_v13 = vld [vmem:[%s152_s4 + $0x30] sm:$0xff]  ;;  %v1110_v16 = vld [vmem:[%s152_s4 + $0x38] sm:$0xff]  ;;  %s1673_s29 = sld [smem:[#allocation2 + $0x6]]  ;;  %s1675_s30 = sld [smem:[#allocation2 + $0xf]] }
  0x4e   : > { %v186_v14 = vmax.f32 %v179_v5, %v1107_v7  ;;  %v188_v15 = vadd.f32 %v1107_v7, %v181_v6  ;;  %s1684_s5 = sld [smem:[#allocation2 + $0x3]]  ;;  %s1695_s6 = sld [smem:[#allocation2 + $0x8]]  ;;  %v1497_v29 = vmov 1.0|1.0  }
  0x4f   : > { %v1670_v17 = vadd.s32 8, %v1659_v9  ;;  %v220_v18 = vadd.s32 4294967295, %v1661_v10  ;;  %v187_v19 = vmax.f32 %v180_v11, %v1108_v8  ;;  %v189_v20 = vadd.f32 %v1108_v8, %v182_v12  ;;  %s1697_s7 = sld [smem:[#allocation2 + $0xc]]  ;;  %s1710_s24 = sld [smem:[#allocation2 + $0x11]] }
  0x50   : > { %v1677_v21 = vmax.f32 %v186_v14, %v1109_v13  ;;  %v195_v22 = vadd.f32 %v1109_v13, %v188_v15  ;;  %v227_v23 = vadd.s32 1, %v1661_v10  ;;  %s1140_s27 = sld [smem:[#allocation2 + $0x5]]  ;;  %s1141_s8 = sld [smem:[#allocation2 + $0xe]] }
  0x51   : > { %vm221_vm0 = vcmp.eq.s32.totalorder %v1659_v9, %v220_v18  ;;  %vm222_vm1 = vcmp.eq.s32.totalorder %v1670_v17, %v220_v18  ;;  %v1682_v24 = vmax.f32 %v187_v19, %v1110_v16  ;;  %v196_v25 = vadd.f32 %v1110_v16, %v189_v20  ;;  %s1120_s14 = sld [smem:[#allocation2 + $0x1]]  ;;  %s1121_s16 = sld [smem:[#allocation2 + $0xa]] }
  0x52   : > { %vm1686_vm2 = vmpackc.low %vm222_vm1, %vm221_vm0  ;;  %v1690_v27 = vmul.f32 0.25, %v195_v22  ;;  %v235_v28 = vstv %s1657_s23  ;;  %vm228_vm3 = vcmp.eq.s32.totalorder %v1659_v9, %v227_v23  ;;  %vm229_vm4 = vcmp.eq.s32.totalorder %v1670_v17, %v227_v23  ;;  %s1150_s17 = sld [smem:[#allocation2 + $0x7]]  ;;  %s1151_s3 = sld [smem:[#allocation2 + $0x10]] }
  0x53   : > { %1260 = vmatprep.subr.msk.bf16.mxu0 %vm1686_vm2, %v1497_v29  ;;  %v1701_v30 = vmul.f32 0.25, %v196_v25  ;;  %v236_v31 = vmul.f32 %v235_v28, %v1677_v21  ;;  %v237_v32 = vmul.f32 %v235_v28, %v1682_v24  ;;  %v239_v33 = vstv %s1663_s20  ;;  %vm1706_vm5 = vmpackc.low %vm229_vm4, %vm228_vm3  ;;  %1268 = vmatprep.subr.msk.bf16.mxu1 %vm1686_vm2, %v1497_v29  ;;  %s1134_s25 = sld [smem:[#allocation2 + $0x4]]  ;;  %s1135_s4 = sld [smem:[#allocation2 + $0xd]] }
  0x54   : > { %1262 = vmatpush3.bf16.msk.msra.mxu0 %vm1686_vm2, %v1497_v29  ;;  %v240_v35 = vmul.f32 %v239_v33, %v1690_v27  ;;  %v337_v36 = vstv %s1665_s26  ;;  %v341_v37 = vstv %s1667_s19  ;;  %1270 = vmatpush3.bf16.msk.msra.mxu1 %vm1686_vm2, %v1497_v29  ;;  %v705_v44 = vstv %s1673_s29  ;;  %s1104_s23 = sshll.u32 %s1649_s28, 4  ;;  %s1170_s20 = sshll.u32 %s1538_s13, 8 }
  0x55   : > { %v241_v38 = vmul.f32 %v239_v33, %v1701_v30  ;;  %1264 = vmatprep.subr.msk.bf16.mxu0 %vm1706_vm5, %v1497_v29  ;;  %v338_v39 = vmul.f32 %v337_v36, %v1677_v21  ;;  %v342_v40 = vmul.f32 %v341_v37, %v1690_v27  ;;  %1272 = vmatprep.subr.msk.bf16.mxu1 %vm1706_vm5, %v1497_v29  ;;  %v709_v45 = vstv %s1675_s30  ;;  %s173_s26 = scalar_lea.vmem [#allocation7], %s1104_s23  ;;  %p1873_p13 = scmp.ne.s32.totalorder %s1861_s21, 0 }
  0x56   : > { %v242_v41 = vadd.f32 %v240_v35, %v236_v31  ;;  %v339_v46 = vmul.f32 %v337_v36, %v1682_v24  ;;  %v343_v47 = vmul.f32 %v341_v37, %v1701_v30  ;;  %v430_v48 = vstv %s1684_s5  ;;  %s1009_s19 = sshll.u32 %s173_s26, 4  ;;  %s1805_s5 = scalar_lea.hbm %s1855_s2, %s1170_s20  ;;  %s1807_s19 = int_to_ptr.vmem [resolvable:$true] %s1009_s19 }
  0x57   : > { %v243_v42 = vadd.f32 %v241_v38, %v237_v32  ;;  %v344_v43 = vadd.f32 %v342_v40, %v338_v39  ;;  %v706_v49 = vmul.f32 %v705_v44, %v1677_v21  ;;  %v710_v50 = vmul.f32 %v709_v45, %v1690_v27  ;;  %s1421_s13 = scalar_lea.vmem %s1807_s19, 256 }
  0x58   : > { %1207 = vmatprep.mubr.msk.f32.mxu0 %vm254_vm6, %v242_v41  ;;  %v806_v51 = vstv %s1695_s6  ;;  %v434_v52 = vstv %s1697_s7  ;;  %v810_v53 = vstv %s1710_s24  ;;  %v431_v54 = vmul.f32 %v430_v48, %v1677_v21  ;;  %s996_s6 = scalar_lea.sflag [#allocation4], %s1649_s28  ;;  %p1422_p12 = scmp.ne.s32.totalorder %s1807_s19, %s1421_s13 }
  0x59   : > { %1208 = vmatmul.mubr.msk.f32.vlgmr.msra.gmra.mrb[0].mxu0 %vm254_vm6, %v243_v42  ;;  %v432_v55 = vmul.f32 %v430_v48, %v1682_v24  ;;  %v435_v56 = vmul.f32 %v434_v52, %v1690_v27  ;;  %v436_v57 = vmul.f32 %v434_v52, %v1701_v30  ;;  %v345_v58 = vadd.f32 %v343_v47, %v339_v46  ;;  %s1499_s7 = smov [#allocation7]  }
  0x5a   : > { %1266 = vmatpush3.bf16.msk.msra.mxu0 %vm1706_vm5, %v1497_v29  ;;  %1214 = vmatprep.mubr.msk.f32.mxu0 %vm254_vm6, %v344_v43  ;;  %v707_v59 = vmul.f32 %v705_v44, %v1682_v24  ;;  %v711_v60 = vmul.f32 %v709_v45, %v1701_v30  ;;  %v712_v62 = vadd.f32 %v710_v50, %v706_v49  ;;  %v531_v7 = vstv %s1140_s27  ;;  %p1423_p7 = pnand %p1422_p12, %p1873_p13  ;;  %s1425_s24 = sshll.u32 %s1499_s7, 4  ;;  %s1426_s24 = int_to_ptr.vmem [resolvable:$false] %s1425_s24 }
  0x5b   : > { %1280 = vmatprep.subr.msk.bf16.mxu0 %vm1686_vm2, %v1497_v29  ;;  %v437_v61 = vadd.f32 %v435_v56, %v431_v54  ;;  %v807_v63 = vmul.f32 %v806_v51, %v1677_v21  ;;  %v811_v0 = vmul.f32 %v810_v53, %v1690_v27  ;;  %v438_v1 = vadd.f32 %v436_v57, %v432_v55  ;;  %s1427_s27 = scalar_lea.vmem %s1426_s24, 512  ;;  %p1428_p6 = scmp.lt.s32.totalorder %s1807_s19, %s1426_s24 }
  0x5c   : > { %v713_v2 = vadd.f32 %v711_v60, %v707_v59  ;;  %v808_v4 = vmul.f32 %v806_v51, %v1682_v24  ;;  %v812_v5 = vmul.f32 %v810_v53, %v1701_v30  ;;  %v535_v8 = vstv %s1141_s8  ;;  %p1424_p3 = pneg %p1423_p7  ;;  %p1429_p4 = scmp.lt.s32.totalorder %s1427_s27, %s1421_s13 }
  0x5d   : > { %1221 = vmatprep.mubr.msk.f32.mxu1 %vm254_vm6, %v437_v61  ;;  %v813_v3 = vadd.f32 %v811_v0, %v807_v63  ;;  %v532_v11 = vmul.f32 %v531_v7, %v1677_v21  ;;  %v536_v12 = vmul.f32 %v535_v8, %v1690_v27  ;;  %v533_v13 = vmul.f32 %v531_v7, %v1682_v24 }
  0x5e   : > { %1222 = vmatmul.mubr.msk.f32.vlgmr.msra.gmra.mrb[0].mxu1 %vm254_vm6, %v438_v1  ;;  %v814_v6 = vadd.f32 %v812_v5, %v808_v4  ;;  %v537_v14 = vmul.f32 %v535_v8, %v1701_v30  ;;  %v204_v18 = vadd.s32 4294967295, %v1659_v9  ;;  %v1498_v19 = vmov 0.0   ;;  %p1430_p5 = por %p1429_p4, %p1428_p6 }
  0x5f   : > { %1274 = vmatpush3.bf16.msk.msra.mxu1 %vm1706_vm5, %v1497_v29  ;;  %v538_v15 = vadd.f32 %v536_v12, %v532_v11  ;;  %v245_v22 = vstv %s1120_s14  ;;  %v249_v23 = vstv %s1121_s16  ;;  %v205_v34 = vadd.s32 4294967295, %v1670_v17 }
  0x60   : > { %v539_v16 = vadd.f32 %v537_v14, %v533_v13  ;;  %vm206_vm7 = vcmp.eq.s32.totalorder %v1661_v10, %v204_v18  ;;  %v247_v25 = vmul.f32 %v245_v22, %v1682_v24  ;;  %v251_v26 = vmul.f32 %v249_v23, %v1701_v30  ;;  %p1431_p0 = pnand %p1430_p5, %p1424_p3 }
  0x61   : > { %1215 = vmatmul.mubr.msk.f32.vlgmr.msra.gmra.mrb[0].mxu0 %vm254_vm6, %v345_v58  ;;  %1228 = vmatprep.mubr.msk.f32.mxu1 %vm254_vm6, %v538_v15  ;;  %v1111_v20 = vsel %vm206_vm7, 1.0, %v1498_v19  ;;  %v246_v28 = vmul.f32 %v245_v22, %v1677_v21  ;;  %v212_v37 = vadd.s32 1, %v1659_v9  ;;  %v715_v39 = vstv %s1150_s17 }
  0x62   : > { %1282 = vmatpush3.bf16.msk.msra.mxu0 %vm1686_vm2, %v1497_v29  ;;  %1242 = vmatprep.mubr.msk.f32.mxu0 %vm254_vm6, %v712_v62  ;;  %v253_v31 = vadd.f32 %v251_v26, %v247_v25  ;;  %v719_v40 = vstv %s1151_s3  ;;  %vm207_vm8 = vcmp.eq.s32.totalorder %v1661_v10, %v205_v34  ;;  %v717_v42 = vmul.f32 %v715_v39, %v1682_v24 }
  0x63   : > { %1284 = vmatprep.subr.msk.bf16.mxu0 %vm1706_vm5, %v1497_v29  ;;  %v721_v43 = vmul.f32 %v719_v40, %v1701_v30  ;;  %vm214_vm9 = vcmp.eq.s32.totalorder %v1661_v10, %v212_v37  ;;  %v716_v44 = vmul.f32 %v715_v39, %v1677_v21  ;;  %v720_v45 = vmul.f32 %v719_v40, %v1690_v27 }
  0x64   : > { %v1112_v46 = vsel %vm207_vm8, 1.0, %v1498_v19  ;;  %v1113_v9 = vsel %vm214_vm9, 1.0, %v1498_v19  ;;  %v213_v50 = vadd.s32 1, %v1670_v17  ;;  %v440_v56 = vstv %s1134_s25 }
  0x65   : > { %1243 = vmatmul.mubr.msk.f32.vlgmr.msra.gmra.mrb[2].mxu0 %vm254_vm6, %v713_v2  ;;  %v723_v47 = vadd.f32 %v721_v43, %v717_v42  ;;  %v722_v48 = vadd.f32 %v720_v45, %v716_v44  ;;  %v444_v57 = vstv %s1135_s4  ;;  %v442_v58 = vmul.f32 %v440_v56, %v1682_v24 }
  0x66   : > { %1286 = vmatpush3.bf16.msk.msra.mxu0 %vm1706_vm5, %v1497_v29  ;;  %1249 = vmatprep.mubr.msk.f32.mxu0 %vm254_vm6, %v813_v3  ;;  %v250_v29 = vmul.f32 %v249_v23, %v1690_v27  ;;  %vm215_vm10 = vcmp.eq.s32.totalorder %v1661_v10, %v213_v50  ;;  %v446_v59 = vmul.f32 %v444_v57, %v1701_v30 }
  0x67   : > { %1229 = vmatmul.mubr.msk.f32.vlgmr.msra.gmra.mrb[0].mxu1 %vm254_vm6, %v539_v16  ;;  %v1114_v55 = vsel %vm215_vm10, 1.0, %v1498_v19  ;;  %v441_v17 = vmul.f32 %v440_v56, %v1677_v21  ;;  %v445_v60 = vmul.f32 %v444_v57, %v1690_v27 }
  0x68   : > { %1235 = vmatprep.mubr.msk.f32.mxu1 %vm254_vm6, %v1111_v20  ;;  %v252_v32 = vadd.f32 %v250_v29, %v246_v28  ;;  %v448_v61 = vadd.f32 %v446_v59, %v442_v58 }
  0x69   : > { %v447_v62 = vadd.f32 %v445_v60, %v441_v17 }
  0x6d   : > { %1250 = vmatmul.mubr.msk.f32.vlgmr.msra.gmra.mrb[2].mxu0 %vm254_vm6, %v814_v6 }
 0x134   : > { %v1216_v33 = vpop.f32.mrb[0].mxu0 }
 0x135   : > { %v1291_v35 = vadd.f32 %v1216_v33, %v253_v31  ;;  %v418_v36 = vpop.f32.mrb[1].mxu0 }
 0x136   : > { %v1292_v38 = vadd.f32 %v418_v36, %v252_v32 }
 0x138   : > { %v1275_v41 = vpack.c.bf16 %v1291_v35, %v1292_v38 }
 0x13a   : > { %1276 = vmatprep.subr.bf16.mxu1 %v1275_v41 }
 0x13b   : > { %1278 = vmatpush3.bf16.msra.mxu1 %v1275_v41 }
 0x13e   : > { %1236 = vmatmul.mubr.msk.f32.vlgmr.msra.gmra.mrb[0].mxu1 %vm254_vm6, %v1112_v46 }
 0x13f   : > { %1256 = vmatprep.mubr.msk.f32.mxu1 %vm254_vm6, %v1113_v9 }
 0x140   : > { %v1251_v49 = vpop.f32.mrb[2].mxu0 }
 0x141   : > { %v1295_v51 = vadd.f32 %v1251_v49, %v723_v47  ;;  %v887_v52 = vpop.f32.mrb[3].mxu0 }
 0x142   : > { %v1296_v53 = vadd.f32 %v887_v52, %v722_v48 }
 0x144   : > { %v1287_v54 = vpack.c.bf16 %v1295_v51, %v1296_v53 }
 0x146   : > { %1288 = vmatprep.subr.bf16.mxu1 %v1287_v54 }
 0x147   : > { %1290 = vmatpush3.bf16.msra.mxu1 %v1287_v54 }
 0x14a   : > { %1257 = vmatmul.mubr.msk.f32.vlgmr.msra.gmra.mrb[0].mxu1 %vm254_vm6, %v1114_v55 }
 0x21d   : > { %v1258_v10 = vpop.f32.mrb[0].mxu1 }
 0x21e   : > { %v1293_v63 = vadd.f32 %v1258_v10, %v448_v61  ;;  %v970_v0 = vpop.f32.mrb[1].mxu1 }
 0x21f   : > { %v1294_v1 = vadd.f32 %v970_v0, %v447_v62 }
 0x220   : > { %v982_v2 = vsub.f32 0.0, %v1293_v63 }
 0x221   : > { %v981_v3 = vsub.f32 0.0, %v1294_v1 }
 0x222   : > { %v985_v4 = vmul.f32 1.442695, %v982_v2 }
 0x223   : > { %v983_v5 = vmul.f32 1.442695, %v981_v3 }
 0x224   : > { %1370 = vpow2.f32 %v985_v4 }
 0x225   : > { %1372 = vpow2.f32 %v983_v5 }
 0x22e   : > { %v1371_v24 = vpop.eup %1370 }
 0x22f   : > { %v1373_v30 = vpop.eup %1372  ;;  %v988_v21 = vadd.f32 1.0, %v1371_v24 }
 0x230   : > { %v987_v6 = vadd.f32 1.0, %v1373_v30 }
 0x231   : > { %1374 = vrcp.f32 %v988_v21 }
 0x232   : > { %1376 = vrcp.f32 %v987_v6 }
 0x23b   : > { %v1375_v27 = vpop.eup %1374 }
 0x23c   : > { %v1377_v7 = vpop.eup %1376  ;;  %994 = vst.msk [vmem:[%s173_s26 + $0x8] sm:$0xff] %vm254_vm6, %v1375_v27 }
 0x23d   : > { %993 = vst.msk [vmem:[%s173_s26] sm:$0xff] %vm254_vm6, %v1377_v7 }
 0x23e   : > { %1434 = shalt.err (!%p1431_p0)
}
 0x23f   : > { %s1435_s8 = scalar_lea.hbm %s1805_s5, 256  ;;  %s1439_s17 = scalar_lea.hbm %s1855_s2, 512 }
 0x240   : > { %p1436_p8 = scmp.ne.s32.totalorder %s1805_s5, %s1435_s8  ;;  %p1440_p1 = scmp.lt.u32.totalorder %s1805_s5, %s1855_s2 }
 0x241   : > { %p1441_p2 = scmp.lt.u32.totalorder %s1439_s17, %s1435_s8  ;;  %p1443_p12 = scmp.lt.u32.totalorder %s1435_s8, %s1805_s5 }
 0x242   : > { %p1437_p9 = pnand %p1436_p8, %p1873_p13 }
 0x243   : > { %p1442_p11 = por %p1441_p2, %p1440_p1 }
 0x244   : > { %p1438_p10 = pneg %p1437_p9 }
 0x245   : > { %p1444_p7 = por %p1443_p12, %p1442_p11 }
 0x247   : > { %p1445_p3 = pnand %p1444_p7, %p1438_p10 }
 0x249   : > { %1448 = shalt.err (!%p1445_p3)
}
 0x24a   : > { %s1500_s4 = smov 128   ;;  %s1501_s23 = smov 8  }
 0x24b   : > { %1313 = dma.vmem_to_hbm [thread:$0]  (%p1873_p13), %s1807_s19, 256, %s1805_s5, %s996_s6, %s1500_s4, %s1500_s4, %s1501_s23  }
 0x24c PF: > { %s1024_s20 = sand.u32 1, %s1479_s9   ;;  %p1874_p6 = scmp.ne.s32.totalorder %s1862_s22, 0 }
 0x24d   : > { %p1875_p4 = scmp.ge.s32.totalorder %s1491_s12, 2  ;;  %s1025_s26 = scalar_lea.sflag [#allocation4], %s1024_s20 }
 0x24f   : > { %p1324_p5 = pnand %p1875_p4, %p1874_p6 }
 0x251   : > { %1474 = dma.done.wait (!%p1324_p5), %s1025_s26, 256  }
 0x252   : > { %1476 = vsyncadd (!%p1324_p5), %s1025_s26, 4294967040  ;;  %p16_p0 = scmp.ge.s32.totalorder %s1542_s15, 4   ;;  %s1876_s9 = smov %s1483_s10 }
 0x253   : > { %s1877_s10 = smov %s1487_s11  ;;  %s1878_s11 = smov %s1554_s18 }
 0x254   : > { %s1879_s12 = smov %s1542_s15  ;;  %18 = sbr.rel (!%p16_p0) target bundleno = 6 (0x6), region = 81 }
 0x25b   :  { %1030 = vsyncpa [#allocation3], 1 }
 0x25c   :  { %1032 = vsyncpa [#allocation3 + $0x1], 1 }
 0x25d   :  { %1033 = vsyncpa [#allocation4], 1 }
 0x25e   :  { %1035 = vsyncpa [#allocation4 + $0x1], 1 }
 0x25f   :  { %1036 = vsyncpa [#allocation5], 1 }
 0x260   :  { %1038 = vsyncpa [#allocation5 + $0x1], 1 }

</bundles_post_ra>
